<compile_context>
chip_gen: v7x
topology: tpu7x:2x2x1
jax: 0.10.0
libtpu: 0.0.40
codegen_flags: <defaults>
</compile_context>

<pallas_src>
import numpy as np
import jax
import jax.numpy as jnp
from jax.experimental import pallas as pl
from jax.experimental.pallas import tpu as pltpu


def _round_up(x, m):
    return ((x + m - 1) // m) * m


# ------------------------- LSTM recurrence kernel ---------------------------
def make_lstm_kernel(num_layers, Tmax, H_pad):
    """One invocation runs all Tmax timesteps; (h, c) for all layers live in
    VMEM scratch; output is the top-layer hidden state per timestep."""

    def kernel(*refs):
        x_ref = refs[0]                                   # (Tmax, B_pad, E_pad) bf16
        layer_refs = refs[1:1 + 3 * num_layers]           # per layer: w_ih, w_hh, b
        out_ref = refs[1 + 3 * num_layers]                # (Tmax, B_pad, H_pad) f32
        h_sc = refs[2 + 3 * num_layers]                   # (L, B_pad, H_pad) f32
        c_sc = refs[3 + 3 * num_layers]                   # (L, B_pad, H_pad) f32

        h_sc[...] = jnp.zeros_like(h_sc)
        c_sc[...] = jnp.zeros_like(c_sc)

        @pl.loop(0, Tmax)
        def _(t):
            x = x_ref[t]                                  # (B_pad, in_pad) bf16
            h_new = None
            for l in range(num_layers):                   # static unroll over layers
                w_ih = layer_refs[3 * l][...]             # (in_pad, 4*H_pad) bf16
                w_hh = layer_refs[3 * l + 1][...]         # (H_pad, 4*H_pad) bf16
                b = layer_refs[3 * l + 2][...]            # (1, 4*H_pad) f32

                h_prev = h_sc[l]                          # (B_pad, H_pad) f32
                c_prev = c_sc[l]

                # bf16 MXU matmuls, f32 accumulation; gate order i, f, g, o.
                gates = (jnp.dot(x, w_ih, preferred_element_type=jnp.float32)
                         + jnp.dot(h_prev.astype(jnp.bfloat16), w_hh,
                                   preferred_element_type=jnp.float32)
                         + b)                             # (B_pad, 4*H_pad) f32

                i_g = jax.nn.sigmoid(gates[:, 0 * H_pad:1 * H_pad])
                f_g = jax.nn.sigmoid(gates[:, 1 * H_pad:2 * H_pad])
                g_g = jnp.tanh(gates[:, 2 * H_pad:3 * H_pad])
                o_g = jax.nn.sigmoid(gates[:, 3 * H_pad:4 * H_pad])

                c_new = f_g * c_prev + i_g * g_g          # f32 state update
                h_new = o_g * jnp.tanh(c_new)

                h_sc[l] = h_new
                c_sc[l] = c_new
                x = h_new.astype(jnp.bfloat16)            # feed next layer

            out_ref[t] = h_new.astype(out_ref.dtype)      # lane-dense (8, 128) store

    return kernel


# --------------------------- vocab head kernel -------------------------------
def head_kernel(h_ref, w_ref, b_ref, o_ref):
    # (M_pad, H_pad) x (H_pad, V_pad) bf16 matmul, f32 accumulate + bias.
    o_ref[...] = (jnp.dot(h_ref[...], w_ref[...], preferred_element_type=jnp.float32)
                  + b_ref[...]).astype(o_ref.dtype)


# ------------------------------- wrapper -------------------------------------
def decoder_rnn_forward_pallas(features, captions, lengths, params,
                               embed_size, hidden_size, vocab_size, num_layers):
    """Reproduces DecoderRNN.forward:
       embed -> concat(features, embeddings) -> pack -> LSTM -> linear(packed)."""
    B = features.shape[0]
    E, H, V, L = embed_size, hidden_size, vocab_size, num_layers
    B_pad = _round_up(B, 8)
    E_pad = _round_up(E, 128)
    H_pad = _round_up(H, 128)
    V_pad = _round_up(V, 128)

    # --- glue: embedding lookup + concat, time-major, (8,128)-pad, bf16 cast ---
    emb = jnp.take(params["embed_w"], captions, axis=0)            # (B, T, E)
    seq = jnp.concatenate([features[:, None, :], emb], axis=1)     # (B, Tmax, E)
    Tmax = seq.shape[1]
    x_tm = jnp.transpose(seq, (1, 0, 2))                           # (Tmax, B, E)
    x_tm = jnp.pad(x_tm, ((0, 0), (0, B_pad - B),
                          (0, E_pad - E))).astype(jnp.bfloat16)    # (Tmax, B_pad, E_pad)

    # --- weights: per-gate padded to H_pad lanes, pre-transposed, bf16 ---
    def pad_gate_weight(w, in_dim, in_pad):
        w4 = w.reshape(4, H, in_dim)                               # gate order i,f,g,o
        w4 = jnp.pad(w4, ((0, 0), (0, H_pad - H), (0, in_pad - in_dim)))
        return jnp.transpose(w4, (2, 0, 1)).reshape(in_pad, 4 * H_pad).astype(jnp.bfloat16)

    def pad_gate_bias(b):
        b4 = jnp.pad(b.reshape(4, H), ((0, 0), (0, H_pad - H)))
        return b4.reshape(1, 4 * H_pad).astype(jnp.float32)

    kernel_inputs = [x_tm]
    in_specs = [pl.BlockSpec((Tmax, B_pad, E_pad), lambda i: (0, 0, 0))]
    for l in range(L):
        in_dim = E if l == 0 else H
        in_pad = E_pad if l == 0 else H_pad
        kernel_inputs += [
            pad_gate_weight(params[f"w_ih_{l}"], in_dim, in_pad),
            pad_gate_weight(params[f"w_hh_{l}"], H, H_pad),
            pad_gate_bias(params[f"b_ih_{l}"] + params[f"b_hh_{l}"]),
        ]
        in_specs += [
            pl.BlockSpec((in_pad, 4 * H_pad), lambda i: (0, 0)),
            pl.BlockSpec((H_pad, 4 * H_pad), lambda i: (0, 0)),
            pl.BlockSpec((1, 4 * H_pad), lambda i: (0, 0)),
        ]

    lstm_kernel = make_lstm_kernel(L, Tmax, H_pad)
    h_top = pl.pallas_call(
        lstm_kernel,
        out_shape=jax.ShapeDtypeStruct((Tmax, B_pad, H_pad), jnp.float32),
        grid_spec=pltpu.PrefetchScalarGridSpec(
            num_scalar_prefetch=0,
            grid=(1,),                                   # single invocation; time loop fused in-kernel
            in_specs=in_specs,
            out_specs=pl.BlockSpec((Tmax, B_pad, H_pad), lambda i: (0, 0, 0)),
            scratch_shapes=[
                pltpu.VMEM((L, B_pad, H_pad), jnp.float32),   # h state
                pltpu.VMEM((L, B_pad, H_pad), jnp.float32),   # c state
            ],
        ),
        compiler_params=pltpu.CompilerParams(
            dimension_semantics=("arbitrary",),
        ),
    )(*kernel_inputs)                                            # (Tmax, B_pad, H_pad)

    # --- glue: emulate pack_padded_sequence(enforce_sorted=False) row order ---
    # TODO(synk): host-side index construction requires concrete lengths (not jit-traceable).
    lengths_np = np.asarray(lengths)
    sorted_b = np.argsort(-lengths_np, kind="stable")            # descending, stable
    t_idx, b_idx = [], []
    for t in range(int(lengths_np.max())):
        for b in sorted_b:
            if lengths_np[b] > t:
                t_idx.append(t)
                b_idx.append(int(b))
    t_idx = jnp.asarray(t_idx, dtype=jnp.int32)
    b_idx = jnp.asarray(b_idx, dtype=jnp.int32)
    n_pack = int(lengths_np.sum())
    M_pad = _round_up(n_pack, 8)

    # gather packed rows FIRST, then project (no wasted head FLOPs on padding)
    h_packed = h_top[t_idx, b_idx]                               # (n_pack, H_pad) f32
    h_packed = jnp.pad(h_packed, ((0, M_pad - n_pack), (0, 0))).astype(jnp.bfloat16)

    w_lin = jnp.pad(params["lin_w"].T,
                    ((0, H_pad - H), (0, V_pad - V))).astype(jnp.bfloat16)   # (H_pad, V_pad)
    b_lin = jnp.pad(params["lin_b"].reshape(1, V),
                    ((0, 0), (0, V_pad - V))).astype(jnp.float32)            # (1, V_pad)

    logits_pad = pl.pallas_call(
        head_kernel,
        out_shape=jax.ShapeDtypeStruct((M_pad, V_pad), jnp.float32),
        grid_spec=pltpu.PrefetchScalarGridSpec(
            num_scalar_prefetch=0,
            grid=(1,),
            in_specs=[
                pl.BlockSpec((M_pad, H_pad), lambda i: (0, 0)),
                pl.BlockSpec((H_pad, V_pad), lambda i: (0, 0)),
                pl.BlockSpec((1, V_pad), lambda i: (0, 0)),
            ],
            out_specs=pl.BlockSpec((M_pad, V_pad), lambda i: (0, 0)),
        ),
        compiler_params=pltpu.CompilerParams(
            dimension_semantics=("arbitrary",),
        ),
    )(h_packed, w_lin, b_lin)                                    # (M_pad, V_pad)

    return logits_pad[:n_pack, :V]                               # (sum(lengths), V)


# ---------------- pure-JAX reference (same bf16-matmul numerics) -------------
def decoder_rnn_forward_ref(features, captions, lengths, params,
                            embed_size, hidden_size, vocab_size, num_layers):
    B = features.shape[0]
    E, H, V, L = embed_size, hidden_size, vocab_size, num_layers
    emb = jnp.take(params["embed_w"], captions, axis=0)
    seq = jnp.concatenate([features[:, None, :], emb], axis=1)   # (B, Tmax, E)
    Tmax = seq.shape[1]

    def bdot(a, b):
        return jnp.dot(a.astype(jnp.bfloat16), b.astype(jnp.bfloat16),
                       preferred_element_type=jnp.float32)

    h = [jnp.zeros((B, H), jnp.float32) for _ in range(L)]
    c = [jnp.zeros((B, H), jnp.float32) for _ in range(L)]
    h_tm = []
    for t in range(Tmax):
        x = seq[:, t, :]
        for l in range(L):
            gates = (bdot(x, params[f"w_ih_{l}"].T) + bdot(h[l], params[f"w_hh_{l}"].T)
                     + params[f"b_ih_{l}"] + params[f"b_hh_{l}"])
            i_g = jax.nn.sigmoid(gates[:, 0 * H:1 * H])
            f_g = jax.nn.sigmoid(gates[:, 1 * H:2 * H])
            g_g = jnp.tanh(gates[:, 2 * H:3 * H])
            o_g = jax.nn.sigmoid(gates[:, 3 * H:4 * H])
            c[l] = f_g * c[l] + i_g * g_g
            h[l] = o_g * jnp.tanh(c[l])
            x = h[l]
        h_tm.append(h[L - 1])
    h_tm = jnp.stack(h_tm, axis=0)                               # (Tmax, B, H)

    lengths_np = np.asarray(lengths)
    sorted_b = np.argsort(-lengths_np, kind="stable")
    rows = []
    for t in range(int(lengths_np.max())):
        for b in sorted_b:
            if lengths_np[b] > t:
                rows.append(h_tm[t, b])
    h_packed = jnp.stack(rows, axis=0)
    return bdot(h_packed, params["lin_w"].T) + params["lin_b"]


if __name__ == "__main__":
    # hyper-params (small, consistent with the module)
    embed_size, hidden_size, vocab_size, num_layers = 32, 32, 48, 2
    B, T_cap = 2, 8                                              # Tmax = T_cap + 1 = 9

    key = jax.random.PRNGKey(0)
    keys = jax.random.split(key, 16)

    # deterministic parameter init (shapes from __init__ / init_weights)
    params = {
        "embed_w": jax.random.uniform(keys[0], (vocab_size, embed_size),
                                      jnp.float32, -0.1, 0.1),
        "lin_w": jax.random.uniform(keys[1], (vocab_size, hidden_size),
                                    jnp.float32, -0.1, 0.1),
        "lin_b": jnp.zeros((vocab_size,), jnp.float32),
    }
    stdv = 1.0 / np.sqrt(hidden_size)
    kidx = 2
    for l in range(num_layers):
        in_dim = embed_size if l == 0 else hidden_size
        params[f"w_ih_{l}"] = jax.random.uniform(
            keys[kidx], (4 * hidden_size, in_dim), jnp.float32, -stdv, stdv); kidx += 1
        params[f"w_hh_{l}"] = jax.random.uniform(
            keys[kidx], (4 * hidden_size, hidden_size), jnp.float32, -stdv, stdv); kidx += 1
        params[f"b_ih_{l}"] = jax.random.uniform(
            keys[kidx], (4 * hidden_size,), jnp.float32, -stdv, stdv); kidx += 1
        params[f"b_hh_{l}"] = jax.random.uniform(
            keys[kidx], (4 * hidden_size,), jnp.float32, -stdv, stdv); kidx += 1

    # example inputs
    features = jax.random.normal(keys[kidx], (B, embed_size), jnp.float32); kidx += 1
    captions = jax.random.randint(keys[kidx], (B, T_cap), 0, vocab_size, jnp.int32)
    lengths = [9, 6]   # lengths over the (features + captions) sequence, distinct

    out = decoder_rnn_forward_pallas(features, captions, lengths, params,
                                     embed_size, hidden_size, vocab_size, num_layers)
    out = jax.block_until_ready(out)

    ref = decoder_rnn_forward_ref(features, captions, lengths, params,
                                  embed_size, hidden_size, vocab_size, num_layers)
    assert out.shape == (sum(lengths), vocab_size), out.shape
    # bf16-operand MXU matmuls (as recommended for TPU) -> compare at bf16-appropriate tolerance
    np.testing.assert_allclose(np.asarray(out), np.asarray(ref), atol=2e-3, rtol=2e-3)

    print("KERNEL_OK")
</pallas_src>

<mosaic_0001>
module attributes {stable_mosaic.version = 11 : i64} {
  func.func @kernel(%arg0: i32, %arg1: memref<9x8x128xbf16, #tpu.memory_space<vmem>>, %arg2: memref<128x512xbf16, #tpu.memory_space<vmem>>, %arg3: memref<128x512xbf16, #tpu.memory_space<vmem>>, %arg4: memref<1x512xf32, #tpu.memory_space<vmem>>, %arg5: memref<128x512xbf16, #tpu.memory_space<vmem>>, %arg6: memref<128x512xbf16, #tpu.memory_space<vmem>>, %arg7: memref<1x512xf32, #tpu.memory_space<vmem>>, %arg8: memref<9x8x128xf32, #tpu.memory_space<vmem>>, %arg9: memref<2x8x128xf32, #tpu.memory_space<vmem>>, %arg10: memref<2x8x128xf32, #tpu.memory_space<vmem>>) attributes {dimension_semantics = [#tpu.dimension_semantics<arbitrary>], iteration_bounds = array<i64: 1>, scalar_prefetch = 0 : i64, scratch_operands = 2 : i64, tpu.core_type = #tpu.core_type<tc>, window_params = [{pipeline_mode = #tpu.pipeline_mode<synchronous>, transform_indices = @transform_0, window_bounds = array<i64: 9, 8, 128>}, {pipeline_mode = #tpu.pipeline_mode<synchronous>, transform_indices = @transform_1, window_bounds = array<i64: 128, 512>}, {pipeline_mode = #tpu.pipeline_mode<synchronous>, transform_indices = @transform_2, window_bounds = array<i64: 128, 512>}, {pipeline_mode = #tpu.pipeline_mode<synchronous>, transform_indices = @transform_3, window_bounds = array<i64: 1, 512>}, {pipeline_mode = #tpu.pipeline_mode<synchronous>, transform_indices = @transform_4, window_bounds = array<i64: 128, 512>}, {pipeline_mode = #tpu.pipeline_mode<synchronous>, transform_indices = @transform_5, window_bounds = array<i64: 128, 512>}, {pipeline_mode = #tpu.pipeline_mode<synchronous>, transform_indices = @transform_6, window_bounds = array<i64: 1, 512>}, {pipeline_mode = #tpu.pipeline_mode<synchronous>, transform_indices = @transform_7, window_bounds = array<i64: 9, 8, 128>}]} {
    %cst = arith.constant 0.000000e+00 : f32
    %0 = vector.broadcast %cst : f32 to vector<2x8x128xf32>
    %c0 = arith.constant 0 : index
    %c0_0 = arith.constant 0 : index
    %c0_1 = arith.constant 0 : index
    %1 = vector.load %arg9[%c0, %c0_0, %c0_1] : memref<2x8x128xf32, #tpu.memory_space<vmem>>, vector<2x8x128xf32>
    tpu.vector_store %arg9[%c0, %c0_0, %c0_1], %0 {strides = array<i32>} : memref<2x8x128xf32, #tpu.memory_space<vmem>>, vector<2x8x128xf32>,
    %cst_2 = arith.constant 0.000000e+00 : f32
    %2 = vector.broadcast %cst_2 : f32 to vector<2x8x128xf32>
    %c0_3 = arith.constant 0 : index
    %c0_4 = arith.constant 0 : index
    %c0_5 = arith.constant 0 : index
    %3 = vector.load %arg10[%c0_3, %c0_4, %c0_5] : memref<2x8x128xf32, #tpu.memory_space<vmem>>, vector<2x8x128xf32>
    tpu.vector_store %arg10[%c0_3, %c0_4, %c0_5], %2 {strides = array<i32>} : memref<2x8x128xf32, #tpu.memory_space<vmem>>, vector<2x8x128xf32>,
    %c0_i32 = arith.constant 0 : i32
    %c9_i32 = arith.constant 9 : i32
    %4 = arith.addi %c0_i32, %c9_i32 : i32
    %c1_i32 = arith.constant 1 : i32
    scf.for %arg11 = %c0_i32 to %4 step %c1_i32  : i32 {
      %c1_i32_7 = arith.constant 1 : i32
      %5 = arith.muli %arg11, %c1_i32_7 : i32
      %c0_i32_8 = arith.constant 0 : i32
      %6 = arith.addi %c0_i32_8, %5 : i32
      %7 = arith.index_cast %6 : i32 to index
      %c0_9 = arith.constant 0 : index
      %c0_10 = arith.constant 0 : index
      %8 = vector.load %arg1[%7, %c0_9, %c0_10] : memref<9x8x128xbf16, #tpu.memory_space<vmem>>, vector<1x8x128xbf16>
      %9 = vector.shape_cast %8 : vector<1x8x128xbf16> to vector<8x128xbf16>
      %c0_11 = arith.constant 0 : index
      %c0_12 = arith.constant 0 : index
      %10 = vector.load %arg2[%c0_11, %c0_12] : memref<128x512xbf16, #tpu.memory_space<vmem>>, vector<128x512xbf16>
      %c0_13 = arith.constant 0 : index
      %c0_14 = arith.constant 0 : index
      %11 = vector.load %arg3[%c0_13, %c0_14] : memref<128x512xbf16, #tpu.memory_space<vmem>>, vector<128x512xbf16>
      %c0_15 = arith.constant 0 : index
      %c0_16 = arith.constant 0 : index
      %12 = vector.load %arg4[%c0_15, %c0_16] : memref<1x512xf32, #tpu.memory_space<vmem>>, vector<1x512xf32>
      %c0_17 = arith.constant 0 : index
      %c0_18 = arith.constant 0 : index
      %c0_19 = arith.constant 0 : index
      %13 = vector.load %arg9[%c0_17, %c0_18, %c0_19] : memref<2x8x128xf32, #tpu.memory_space<vmem>>, vector<1x8x128xf32>
      %14 = vector.shape_cast %13 : vector<1x8x128xf32> to vector<8x128xf32>
      %c0_20 = arith.constant 0 : index
      %c0_21 = arith.constant 0 : index
      %c0_22 = arith.constant 0 : index
      %15 = vector.load %arg10[%c0_20, %c0_21, %c0_22] : memref<2x8x128xf32, #tpu.memory_space<vmem>>, vector<1x8x128xf32>
      %16 = vector.shape_cast %15 : vector<1x8x128xf32> to vector<8x128xf32>
      %cst_23 = arith.constant dense<0.000000e+00> : vector<8x512xf32>
      %17 = tpu.matmul %9, %10, %cst_23 {dimension_numbers = #tpu.dot_dimension_numbers<[1], [0], [0], [1], [0, 0, 1, 1], [], []>} : vector<8x128xbf16>, vector<128x512xbf16>, vector<8x512xf32> -> vector<8x512xf32>
      %18 = arith.truncf %14 : vector<8x128xf32> to vector<8x128xbf16>
      %cst_24 = arith.constant dense<0.000000e+00> : vector<8x512xf32>
      %19 = tpu.matmul %18, %11, %cst_24 {dimension_numbers = #tpu.dot_dimension_numbers<[1], [0], [0], [1], [0, 0, 1, 1], [], []>} : vector<8x128xbf16>, vector<128x512xbf16>, vector<8x512xf32> -> vector<8x512xf32>
      %20 = arith.addf %17, %19 : vector<8x512xf32>
      %21 = vector.broadcast %12 : vector<1x512xf32> to vector<8x512xf32>
      %22 = arith.addf %20, %21 : vector<8x512xf32>
      %23 = vector.extract_strided_slice %22 {offsets = [0, 0], sizes = [8, 128], strides = [1, 1]} : vector<8x512xf32> to vector<8x128xf32>
      %24 = arith.negf %23 : vector<8x128xf32>
      %25 = math.exp %24 : vector<8x128xf32>
      %cst_25 = arith.constant 1.000000e+00 : f32
      %26 = vector.broadcast %cst_25 : f32 to vector<8x128xf32>
      %27 = arith.addf %26, %25 : vector<8x128xf32>
      %28 = arith.divf %26, %27 : vector<8x128xf32>
      %29 = vector.extract_strided_slice %22 {offsets = [0, 128], sizes = [8, 128], strides = [1, 1]} : vector<8x512xf32> to vector<8x128xf32>
      %30 = arith.negf %29 : vector<8x128xf32>
      %31 = math.exp %30 : vector<8x128xf32>
      %cst_26 = arith.constant 1.000000e+00 : f32
      %32 = vector.broadcast %cst_26 : f32 to vector<8x128xf32>
      %33 = arith.addf %32, %31 : vector<8x128xf32>
      %34 = arith.divf %32, %33 : vector<8x128xf32>
      %35 = vector.extract_strided_slice %22 {offsets = [0, 256], sizes = [8, 128], strides = [1, 1]} : vector<8x512xf32> to vector<8x128xf32>
      %36 = math.tanh %35 : vector<8x128xf32>
      %37 = vector.extract_strided_slice %22 {offsets = [0, 384], sizes = [8, 128], strides = [1, 1]} : vector<8x512xf32> to vector<8x128xf32>
      %38 = arith.negf %37 : vector<8x128xf32>
      %39 = math.exp %38 : vector<8x128xf32>
      %cst_27 = arith.constant 1.000000e+00 : f32
      %40 = vector.broadcast %cst_27 : f32 to vector<8x128xf32>
      %41 = arith.addf %40, %39 : vector<8x128xf32>
      %42 = arith.divf %40, %41 : vector<8x128xf32>
      %43 = arith.mulf %34, %16 : vector<8x128xf32>
      %44 = arith.mulf %28, %36 : vector<8x128xf32>
      %45 = arith.addf %43, %44 : vector<8x128xf32>
      %46 = math.tanh %45 : vector<8x128xf32>
      %47 = arith.mulf %42, %46 : vector<8x128xf32>
      %c0_28 = arith.constant 0 : index
      %c0_29 = arith.constant 0 : index
      %c0_30 = arith.constant 0 : index
      %48 = vector.load %arg9[%c0_28, %c0_29, %c0_30] : memref<2x8x128xf32, #tpu.memory_space<vmem>>, vector<1x8x128xf32>
      %49 = vector.shape_cast %48 : vector<1x8x128xf32> to vector<8x128xf32>
      %50 = vector.shape_cast %47 : vector<8x128xf32> to vector<1x8x128xf32>
      tpu.vector_store %arg9[%c0_28, %c0_29, %c0_30], %50 {strides = array<i32>} : memref<2x8x128xf32, #tpu.memory_space<vmem>>, vector<1x8x128xf32>,
      %c0_31 = arith.constant 0 : index
      %c0_32 = arith.constant 0 : index
      %c0_33 = arith.constant 0 : index
      %51 = vector.load %arg10[%c0_31, %c0_32, %c0_33] : memref<2x8x128xf32, #tpu.memory_space<vmem>>, vector<1x8x128xf32>
      %52 = vector.shape_cast %51 : vector<1x8x128xf32> to vector<8x128xf32>
      %53 = vector.shape_cast %45 : vector<8x128xf32> to vector<1x8x128xf32>
      tpu.vector_store %arg10[%c0_31, %c0_32, %c0_33], %53 {strides = array<i32>} : memref<2x8x128xf32, #tpu.memory_space<vmem>>, vector<1x8x128xf32>,
      %54 = arith.truncf %47 : vector<8x128xf32> to vector<8x128xbf16>
      %c0_34 = arith.constant 0 : index
      %c0_35 = arith.constant 0 : index
      %55 = vector.load %arg5[%c0_34, %c0_35] : memref<128x512xbf16, #tpu.memory_space<vmem>>, vector<128x512xbf16>
      %c0_36 = arith.constant 0 : index
      %c0_37 = arith.constant 0 : index
      %56 = vector.load %arg6[%c0_36, %c0_37] : memref<128x512xbf16, #tpu.memory_space<vmem>>, vector<128x512xbf16>
      %c0_38 = arith.constant 0 : index
      %c0_39 = arith.constant 0 : index
      %57 = vector.load %arg7[%c0_38, %c0_39] : memref<1x512xf32, #tpu.memory_space<vmem>>, vector<1x512xf32>
      %c1 = arith.constant 1 : index
      %c0_40 = arith.constant 0 : index
      %c0_41 = arith.constant 0 : index
      %58 = vector.load %arg9[%c1, %c0_40, %c0_41] : memref<2x8x128xf32, #tpu.memory_space<vmem>>, vector<1x8x128xf32>
      %59 = vector.shape_cast %58 : vector<1x8x128xf32> to vector<8x128xf32>
      %c1_42 = arith.constant 1 : index
      %c0_43 = arith.constant 0 : index
      %c0_44 = arith.constant 0 : index
      %60 = vector.load %arg10[%c1_42, %c0_43, %c0_44] : memref<2x8x128xf32, #tpu.memory_space<vmem>>, vector<1x8x128xf32>
      %61 = vector.shape_cast %60 : vector<1x8x128xf32> to vector<8x128xf32>
      %cst_45 = arith.constant dense<0.000000e+00> : vector<8x512xf32>
      %62 = tpu.matmul %54, %55, %cst_45 {dimension_numbers = #tpu.dot_dimension_numbers<[1], [0], [0], [1], [0, 0, 1, 1], [], []>} : vector<8x128xbf16>, vector<128x512xbf16>, vector<8x512xf32> -> vector<8x512xf32>
      %63 = arith.truncf %59 : vector<8x128xf32> to vector<8x128xbf16>
      %cst_46 = arith.constant dense<0.000000e+00> : vector<8x512xf32>
      %64 = tpu.matmul %63, %56, %cst_46 {dimension_numbers = #tpu.dot_dimension_numbers<[1], [0], [0], [1], [0, 0, 1, 1], [], []>} : vector<8x128xbf16>, vector<128x512xbf16>, vector<8x512xf32> -> vector<8x512xf32>
      %65 = arith.addf %62, %64 : vector<8x512xf32>
      %66 = vector.broadcast %57 : vector<1x512xf32> to vector<8x512xf32>
      %67 = arith.addf %65, %66 : vector<8x512xf32>
      %68 = vector.extract_strided_slice %67 {offsets = [0, 0], sizes = [8, 128], strides = [1, 1]} : vector<8x512xf32> to vector<8x128xf32>
      %69 = arith.negf %68 : vector<8x128xf32>
      %70 = math.exp %69 : vector<8x128xf32>
      %cst_47 = arith.constant 1.000000e+00 : f32
      %71 = vector.broadcast %cst_47 : f32 to vector<8x128xf32>
      %72 = arith.addf %71, %70 : vector<8x128xf32>
      %73 = arith.divf %71, %72 : vector<8x128xf32>
      %74 = vector.extract_strided_slice %67 {offsets = [0, 128], sizes = [8, 128], strides = [1, 1]} : vector<8x512xf32> to vector<8x128xf32>
      %75 = arith.negf %74 : vector<8x128xf32>
      %76 = math.exp %75 : vector<8x128xf32>
      %cst_48 = arith.constant 1.000000e+00 : f32
      %77 = vector.broadcast %cst_48 : f32 to vector<8x128xf32>
      %78 = arith.addf %77, %76 : vector<8x128xf32>
      %79 = arith.divf %77, %78 : vector<8x128xf32>
      %80 = vector.extract_strided_slice %67 {offsets = [0, 256], sizes = [8, 128], strides = [1, 1]} : vector<8x512xf32> to vector<8x128xf32>
      %81 = math.tanh %80 : vector<8x128xf32>
      %82 = vector.extract_strided_slice %67 {offsets = [0, 384], sizes = [8, 128], strides = [1, 1]} : vector<8x512xf32> to vector<8x128xf32>
      %83 = arith.negf %82 : vector<8x128xf32>
      %84 = math.exp %83 : vector<8x128xf32>
      %cst_49 = arith.constant 1.000000e+00 : f32
      %85 = vector.broadcast %cst_49 : f32 to vector<8x128xf32>
      %86 = arith.addf %85, %84 : vector<8x128xf32>
      %87 = arith.divf %85, %86 : vector<8x128xf32>
      %88 = arith.mulf %79, %61 : vector<8x128xf32>
      %89 = arith.mulf %73, %81 : vector<8x128xf32>
      %90 = arith.addf %88, %89 : vector<8x128xf32>
      %91 = math.tanh %90 : vector<8x128xf32>
      %92 = arith.mulf %87, %91 : vector<8x128xf32>
      %c1_50 = arith.constant 1 : index
      %c0_51 = arith.constant 0 : index
      %c0_52 = arith.constant 0 : index
      %93 = vector.load %arg9[%c1_50, %c0_51, %c0_52] : memref<2x8x128xf32, #tpu.memory_space<vmem>>, vector<1x8x128xf32>
      %94 = vector.shape_cast %93 : vector<1x8x128xf32> to vector<8x128xf32>
      %95 = vector.shape_cast %92 : vector<8x128xf32> to vector<1x8x128xf32>
      tpu.vector_store %arg9[%c1_50, %c0_51, %c0_52], %95 {strides = array<i32>} : memref<2x8x128xf32, #tpu.memory_space<vmem>>, vector<1x8x128xf32>,
      %c1_53 = arith.constant 1 : index
      %c0_54 = arith.constant 0 : index
      %c0_55 = arith.constant 0 : index
      %96 = vector.load %arg10[%c1_53, %c0_54, %c0_55] : memref<2x8x128xf32, #tpu.memory_space<vmem>>, vector<1x8x128xf32>
      %97 = vector.shape_cast %96 : vector<1x8x128xf32> to vector<8x128xf32>
      %98 = vector.shape_cast %90 : vector<8x128xf32> to vector<1x8x128xf32>
      tpu.vector_store %arg10[%c1_53, %c0_54, %c0_55], %98 {strides = array<i32>} : memref<2x8x128xf32, #tpu.memory_space<vmem>>, vector<1x8x128xf32>,
      %99 = arith.index_cast %6 : i32 to index
      %c0_56 = arith.constant 0 : index
      %c0_57 = arith.constant 0 : index
      %100 = vector.load %arg8[%99, %c0_56, %c0_57] : memref<9x8x128xf32, #tpu.memory_space<vmem>>, vector<1x8x128xf32>
      %101 = vector.shape_cast %100 : vector<1x8x128xf32> to vector<8x128xf32>
      %102 = vector.shape_cast %92 : vector<8x128xf32> to vector<1x8x128xf32>
      tpu.vector_store %arg8[%99, %c0_56, %c0_57], %102 {strides = array<i32>} : memref<9x8x128xf32, #tpu.memory_space<vmem>>, vector<1x8x128xf32>,
    }
    %c9_i32_6 = arith.constant 9 : i32
    return
  }
  func.func @transform_0(%arg0: i32) -> (i32, i32, i32) {
    %c0_i32 = arith.constant 0 : i32
    %c0_i32_0 = arith.constant 0 : i32
    %c0_i32_1 = arith.constant 0 : i32
    %c0_i32_2 = arith.constant 0 : i32
    return %c0_i32, %c0_i32_0, %c0_i32_1 : i32, i32, i32
  }
  func.func @transform_1(%arg0: i32) -> (i32, i32) {
    %c0_i32 = arith.constant 0 : i32
    %c0_i32_0 = arith.constant 0 : i32
    %c0_i32_1 = arith.constant 0 : i32
    return %c0_i32, %c0_i32_0 : i32, i32
  }
  func.func @transform_2(%arg0: i32) -> (i32, i32) {
    %c0_i32 = arith.constant 0 : i32
    %c0_i32_0 = arith.constant 0 : i32
    %c0_i32_1 = arith.constant 0 : i32
    return %c0_i32, %c0_i32_0 : i32, i32
  }
  func.func @transform_3(%arg0: i32) -> (i32, i32) {
    %c0_i32 = arith.constant 0 : i32
    %c0_i32_0 = arith.constant 0 : i32
    %c0_i32_1 = arith.constant 0 : i32
    return %c0_i32, %c0_i32_0 : i32, i32
  }
  func.func @transform_4(%arg0: i32) -> (i32, i32) {
    %c0_i32 = arith.constant 0 : i32
    %c0_i32_0 = arith.constant 0 : i32
    %c0_i32_1 = arith.constant 0 : i32
    return %c0_i32, %c0_i32_0 : i32, i32
  }
  func.func @transform_5(%arg0: i32) -> (i32, i32) {
    %c0_i32 = arith.constant 0 : i32
    %c0_i32_0 = arith.constant 0 : i32
    %c0_i32_1 = arith.constant 0 : i32
    return %c0_i32, %c0_i32_0 : i32, i32
  }
  func.func @transform_6(%arg0: i32) -> (i32, i32) {
    %c0_i32 = arith.constant 0 : i32
    %c0_i32_0 = arith.constant 0 : i32
    %c0_i32_1 = arith.constant 0 : i32
    return %c0_i32, %c0_i32_0 : i32, i32
  }
  func.func @transform_7(%arg0: i32) -> (i32, i32, i32) {
    %c0_i32 = arith.constant 0 : i32
    %c0_i32_0 = arith.constant 0 : i32
    %c0_i32_1 = arith.constant 0 : i32
    %c0_i32_2 = arith.constant 0 : i32
    return %c0_i32, %c0_i32_0, %c0_i32_1 : i32, i32, i32
  }
}

</mosaic_0001>

<bundles_post_ra>
// kernel: tpu_custom_call.1
= control target key start
LH: loop header
LB: loop body
LE: loop exit
PB: predicated region body
PF: predicated region fallthrough
CT: control target
= control target key end

     0   :  { %12 = vsyncpa [#allocation5], 0  ;;  %s2063_s0 = inlined_call_operand.hbm [shape: bf16[9,8,128], index: 0, kind: input, shape index: {}]   ;;  %s2064_s1 = inlined_call_operand.hbm [shape: bf16[128,512], index: 1, kind: input, shape index: {}]   ;;  %s2065_s2 = inlined_call_operand.hbm [shape: bf16[128,512], index: 2, kind: input, shape index: {}]   ;;  %s2066_s3 = inlined_call_operand.vmem [shape: f32[1,512], index: 3, kind: input, shape index: {}]   ;;  %s2067_s4 = inlined_call_operand.hbm [shape: bf16[128,512], index: 4, kind: input, shape index: {}]   ;;  %s2068_s5 = inlined_call_operand.hbm [shape: bf16[128,512], index: 5, kind: input, shape index: {}]   ;;  %s2069_s6 = inlined_call_operand.vmem [shape: f32[1,512], index: 6, kind: input, shape index: {}]   ;;  %s2070_s7 = inlined_call_operand.hbm [shape: f32[9,8,128], index: 7, kind: output, shape index: {}]  }
   0x1   :  { %13 = vsyncpa [#allocation8], 0 }
   0x2   :  { %14 = vsyncpa [#allocation11], 0 }
   0x3   :  { %15 = vsyncpa [#allocation6], 0  ;;  %s1879_s24 = smov [#allocation7]   ;;  %s1731_s28 = scalar_lea.hbm %s2064_s1, 4096 }
   0x4   :  { %s33_s25 = sshll.u32 %s1879_s24, 4  ;;  %p1732_p0 = scmp.ne.s32.totalorder %s2064_s1, %s1731_s28  ;;  %s34_s25 = int_to_ptr.vmem [resolvable:$true] %s33_s25 }
   0x5   :  { %p1735_p1 = scmp.lt.u32.totalorder %s1731_s28, %s2064_s1 }
   0x7   :  { %p1737_p2 = pnand %p1735_p1, %p1732_p0 }
   0x9   :  { %1740 = shalt.err (!%p1737_p2)
}
   0xa   :  { %s1741_s10 = scalar_lea.vmem %s34_s25, 4096  ;;  %p1746_p4 = scmp.lt.s32.totalorder %s34_s25, %s34_s25 }
   0xb   :  { %p1742_p3 = scmp.ne.s32.totalorder %s34_s25, %s1741_s10  ;;  %p1747_p5 = scmp.lt.s32.totalorder %s1741_s10, %s1741_s10 }
   0xd   :  { %p1748_p6 = por %p1747_p5, %p1746_p4 }
   0xf   :  { %p1749_p7 = pnand %p1748_p6, %p1742_p3 }
  0x11   :  { %1752 = shalt.err (!%p1749_p7)
}
  0x12   :  { %s1880_s11 = smov 256   ;;  %s1881_s12 = smov 16  }
  0x13   :  { %39 = dma.hbm_to_vmem [thread:$0]  %s2064_s1, 4096, %s34_s25, [#allocation8], %s1880_s11, %s1880_s11, %s1881_s12  }
  0x14   :  { %s1882_s15 = smov [#allocation10]   ;;  %s1883_s17 = smov [#allocation4]  }
  0x15   :  { %s59_s16 = sshll.u32 %s1882_s15, 4  ;;  %s21_s18 = sshll.u32 %s1883_s17, 4  ;;  %s60_s16 = int_to_ptr.vmem [resolvable:$true] %s59_s16  ;;  %s22_s18 = int_to_ptr.vmem [resolvable:$true] %s21_s18 }
  0x16   :  { %s1753_s21 = scalar_lea.hbm %s2067_s4, 4096 }
  0x17   :  { %p1754_p8 = scmp.ne.s32.totalorder %s2067_s4, %s1753_s21  ;;  %p1757_p9 = scmp.lt.u32.totalorder %s1753_s21, %s2067_s4 }
  0x19   :  { %p1759_p10 = pnand %p1757_p9, %p1754_p8 }
  0x1b   :  { %1762 = shalt.err (!%p1759_p10)
}
  0x1c   :  { %s1763_s1 = scalar_lea.vmem %s60_s16, 4096  ;;  %p1768_p12 = scmp.lt.s32.totalorder %s60_s16, %s60_s16 }
  0x1d   :  { %p1764_p11 = scmp.ne.s32.totalorder %s60_s16, %s1763_s1  ;;  %p1769_p13 = scmp.lt.s32.totalorder %s1763_s1, %s1763_s1 }
  0x1f   :  { %p1770_p0 = por %p1769_p13, %p1768_p12 }
  0x21   :  { %p1771_p1 = pnand %p1770_p0, %p1764_p11 }
  0x23   :  { %1774 = shalt.err (!%p1771_p1)
}
  0x24   :  { %65 = dma.hbm_to_vmem [thread:$0]  %s2067_s4, 4096, %s60_s16, [#allocation11], %s1880_s11, %s1880_s11, %s1881_s12  }
  0x25   :  { %s1775_s30 = scalar_lea.hbm %s2063_s0, 576 }
  0x26   :  { %p1776_p2 = scmp.ne.s32.totalorder %s2063_s0, %s1775_s30  ;;  %p1779_p3 = scmp.lt.u32.totalorder %s1775_s30, %s2063_s0 }
  0x28   :  { %p1781_p4 = pnand %p1779_p3, %p1776_p2 }
  0x2a   :  { %1784 = shalt.err (!%p1781_p4)
}
  0x2b   :  { %s1785_s14 = scalar_lea.vmem %s22_s18, 576  ;;  %p1790_p6 = scmp.lt.s32.totalorder %s22_s18, %s22_s18 }
  0x2c   :  { %p1786_p5 = scmp.ne.s32.totalorder %s22_s18, %s1785_s14  ;;  %p1791_p7 = scmp.lt.s32.totalorder %s1785_s14, %s1785_s14 }
  0x2e   :  { %p1792_p8 = por %p1791_p7, %p1790_p6 }
  0x30   :  { %p1793_p9 = pnand %p1792_p8, %p1786_p5 }
  0x32   :  { %1796 = shalt.err (!%p1793_p9)
}
  0x33   :  { %s1884_s4 = smov 64   ;;  %s1885_s15 = smov 4  }
  0x34   :  { %27 = dma.hbm_to_vmem [thread:$0]  %s2063_s0, 576, %s22_s18, [#allocation5], %s1884_s4, %s1884_s4, %s1885_s15  }
  0x35   :  { %s1886_s19 = smov [#allocation9]   ;;  %s1887_s21 = smov [#allocation12]  }
  0x36   :  { %s45_s20 = sshll.u32 %s1886_s19, 4  ;;  %s71_s22 = sshll.u32 %s1887_s21, 4  ;;  %s46_s20 = int_to_ptr.vmem [resolvable:$true] %s45_s20  ;;  %s72_s22 = int_to_ptr.vmem [resolvable:$true] %s71_s22 }
  0x37   :  { %s1797_s26 = scalar_lea.hbm %s2065_s2, 4096 }
  0x38   :  { %p1798_p10 = scmp.ne.s32.totalorder %s2065_s2, %s1797_s26  ;;  %p1801_p11 = scmp.lt.u32.totalorder %s1797_s26, %s2065_s2 }
  0x3a   :  { %p1803_p12 = pnand %p1801_p11, %p1798_p10 }
  0x3c   :  { %1806 = shalt.err (!%p1803_p12)
}
  0x3d   :  { %s1807_s0 = scalar_lea.vmem %s46_s20, 4096  ;;  %p1812_p0 = scmp.lt.s32.totalorder %s46_s20, %s46_s20 }
  0x3e   :  { %p1808_p13 = scmp.ne.s32.totalorder %s46_s20, %s1807_s0  ;;  %p1813_p1 = scmp.lt.s32.totalorder %s1807_s0, %s1807_s0 }
  0x40   :  { %p1814_p2 = por %p1813_p1, %p1812_p0 }
  0x42   :  { %p1815_p3 = pnand %p1814_p2, %p1808_p13 }
  0x44   :  { %1818 = shalt.err (!%p1815_p3)
}
  0x45   :  { %51 = dma.hbm_to_vmem [thread:$0]  %s2065_s2, 4096, %s46_s20, [#allocation8], %s1880_s11, %s1880_s11, %s1881_s12  }
  0x46   :  { %s1819_s9 = scalar_lea.hbm %s2068_s5, 4096 }
  0x47   :  { %p1820_p4 = scmp.ne.s32.totalorder %s2068_s5, %s1819_s9  ;;  %p1823_p5 = scmp.lt.u32.totalorder %s1819_s9, %s2068_s5 }
  0x49   :  { %p1825_p6 = pnand %p1823_p5, %p1820_p4 }
  0x4b   :  { %1828 = shalt.err (!%p1825_p6)
}
  0x4c   :  { %s1829_s15 = scalar_lea.vmem %s72_s22, 4096  ;;  %p1834_p8 = scmp.lt.s32.totalorder %s72_s22, %s72_s22 }
  0x4d   :  { %p1830_p7 = scmp.ne.s32.totalorder %s72_s22, %s1829_s15  ;;  %p1835_p9 = scmp.lt.s32.totalorder %s1829_s15, %s1829_s15 }
  0x4f   :  { %p1836_p10 = por %p1835_p9, %p1834_p8 }
  0x51   :  { %p1837_p11 = pnand %p1836_p10, %p1830_p7 }
  0x53   :  { %1840 = shalt.err (!%p1837_p11)
}
  0x54   :  { %77 = dma.hbm_to_vmem [thread:$0]  %s2068_s5, 4096, %s72_s22, [#allocation11], %s1880_s11, %s1880_s11, %s1881_s12  }
  0x55   :  { %1867 = dma.done.wait [#allocation5], 576  }
  0x56   :  { %1868 = vsyncadd [#allocation5], 4294966720 }
  0x57   :  { %1869 = dma.done.wait [#allocation8], 8192  }
  0x58   :  { %1870 = vsyncadd [#allocation8], 4294959104 }
  0x59   :  { %1871 = dma.done.wait [#allocation11], 8192  }
  0x5a   :  { %1872 = vsyncadd [#allocation11], 4294959104  ;;  %v1888_v0 = vmov 0.0   ;;  %s2005_s17 = smov 0  }
  0x5b   :  { %96 = vst [vmem:[#allocation2] sm:$0xff] %v1888_v0  ;;  %97 = vst [vmem:[#allocation2 + $0x8] sm:$0xff] %v1888_v0 }
  0x5c   :  { %98 = vst [vmem:[#allocation3] sm:$0xff] %v1888_v0  ;;  %99 = vst [vmem:[#allocation3 + $0x8] sm:$0xff] %v1888_v0 }
  0x5d LB: > { %v1507_v1 = vld [vmem:[#allocation9 + $0x4] ss:$16 sps:$4 sm:$0xff]   ;;  %v1509_v2 = vld [vmem:[#allocation9 + $0xc] ss:$16 sps:$4 sm:$0xff]   ;;  %v1889_v3 = vmov 0   ;;  %s1349_s5 = sshll.u32 %s1877_s17, 2  ;;  %s1877_s17 = sphi %s2005_s17, %s105_s17  }
  0x5e   : > { %369 = vmatprep.mubr.bf16.mxu0 %v1889_v3  ;;  %410 = vmatprep.mubr.bf16.mxu1 %v1889_v3  ;;  %v1511_v4 = vld [vmem:[#allocation9] ss:$16 sps:$4 sm:$0xff]   ;;  %v1512_v5 = vld [vmem:[#allocation9 + $0x8] ss:$16 sps:$4 sm:$0xff]   ;;  %v1513_v6 = vld [vmem:[#allocation9 + $0x24] ss:$16 sps:$4 sm:$0xff]  }
  0x5f   : > { %337 = vmatprep.subr.bf16.mxu0 %v1507_v1  ;;  %378 = vmatprep.subr.bf16.mxu1 %v1509_v2  ;;  %v1515_v7 = vld [vmem:[#allocation9 + $0x2c] ss:$16 sps:$4 sm:$0xff]   ;;  %v1517_v8 = vld [vmem:[#allocation9 + $0x20] ss:$16 sps:$4 sm:$0xff]   ;;  %v1518_v9 = vld [vmem:[#allocation9 + $0x28] ss:$16 sps:$4 sm:$0xff]  }
  0x60   : > { %338 = vmatpush1.bf16.msra.mxu0 %v1511_v4  ;;  %379 = vmatpush1.bf16.msra.mxu1 %v1512_v5  ;;  %v1519_v10 = vld [vmem:[#allocation9 + $0x44] ss:$16 sps:$4 sm:$0xff]   ;;  %v1521_v11 = vld [vmem:[#allocation9 + $0x4c] ss:$16 sps:$4 sm:$0xff]   ;;  %v1523_v12 = vld [vmem:[#allocation9 + $0x40] ss:$16 sps:$4 sm:$0xff]  }
  0x61   : > { %339 = vmatprep.subr.bf16.mxu0 %v1513_v6  ;;  %380 = vmatprep.subr.bf16.mxu1 %v1515_v7  ;;  %v1524_v13 = vld [vmem:[#allocation9 + $0x48] ss:$16 sps:$4 sm:$0xff]   ;;  %v1525_v14 = vld [vmem:[#allocation9 + $0x64] ss:$16 sps:$4 sm:$0xff]   ;;  %v1527_v15 = vld [vmem:[#allocation9 + $0x6c] ss:$16 sps:$4 sm:$0xff]  }
  0x62   : > { %v1529_v16 = vld [vmem:[#allocation9 + $0x60] ss:$16 sps:$4 sm:$0xff]   ;;  %v1530_v17 = vld [vmem:[#allocation9 + $0x68] ss:$16 sps:$4 sm:$0xff]   ;;  %v1531_v18 = vld [vmem:[#allocation9 + $0x84] ss:$16 sps:$4 sm:$0xff]  }
  0x63   : > { %v1533_v19 = vld [vmem:[#allocation9 + $0x8c] ss:$16 sps:$4 sm:$0xff]   ;;  %v1535_v20 = vld [vmem:[#allocation9 + $0x80] ss:$16 sps:$4 sm:$0xff]   ;;  %v1536_v21 = vld [vmem:[#allocation9 + $0x88] ss:$16 sps:$4 sm:$0xff]  }
  0x64   : > { %340 = vmatpush1.bf16.msra.mxu0 %v1517_v8  ;;  %381 = vmatpush1.bf16.msra.mxu1 %v1518_v9  ;;  %v1537_v22 = vld [vmem:[#allocation9 + $0xa4] ss:$16 sps:$4 sm:$0xff]   ;;  %v1539_v23 = vld [vmem:[#allocation9 + $0xac] ss:$16 sps:$4 sm:$0xff]   ;;  %v1541_v24 = vld [vmem:[#allocation9 + $0xa0] ss:$16 sps:$4 sm:$0xff]  }
  0x65   : > { %341 = vmatprep.subr.bf16.mxu0 %v1519_v10  ;;  %382 = vmatprep.subr.bf16.mxu1 %v1521_v11  ;;  %v1542_v25 = vld [vmem:[#allocation9 + $0xa8] ss:$16 sps:$4 sm:$0xff]   ;;  %v1543_v26 = vld [vmem:[#allocation9 + $0xc4] ss:$16 sps:$4 sm:$0xff]   ;;  %v1545_v27 = vld [vmem:[#allocation9 + $0xcc] ss:$16 sps:$4 sm:$0xff]  }
  0x66   : > { %v1547_v28 = vld [vmem:[#allocation9 + $0xc0] ss:$16 sps:$4 sm:$0xff]   ;;  %v1548_v29 = vld [vmem:[#allocation9 + $0xc8] ss:$16 sps:$4 sm:$0xff]   ;;  %v1549_v30 = vld [vmem:[#allocation9 + $0xe4] ss:$16 sps:$4 sm:$0xff]  }
  0x67   : > { %v1551_v31 = vld [vmem:[#allocation9 + $0xec] ss:$16 sps:$4 sm:$0xff]   ;;  %v1553_v32 = vld [vmem:[#allocation9 + $0xe0] ss:$16 sps:$4 sm:$0xff]   ;;  %v1554_v33 = vld [vmem:[#allocation9 + $0xe8] ss:$16 sps:$4 sm:$0xff]  }
  0x68   : > { %342 = vmatpush1.bf16.msra.mxu0 %v1523_v12  ;;  %383 = vmatpush1.bf16.msra.mxu1 %v1524_v13  ;;  %v174_v34 = vld [vmem:[#allocation2] sm:$0xff]  ;;  %v1557_v35 = vld [vmem:[#allocation7 + $0x4] ss:$16 sps:$4 sm:$0xff]   ;;  %v1558_v39 = vld [vmem:[#allocation7 + $0x8] ss:$16 sps:$4 sm:$0xff]   ;;  %s107_s11 = scalar_lea.vmem [#allocation4], %s1349_s5 }
  0x69   : > { %343 = vmatprep.subr.bf16.mxu0 %v1525_v14  ;;  %384 = vmatprep.subr.bf16.mxu1 %v1527_v15  ;;  %v1560_v36 = vld [vmem:[#allocation7 + $0xc] ss:$16 sps:$4 sm:$0xff]   ;;  %v176_v37 = vpack.c.bf16 %v174_v34, %v174_v34  ;;  %v1555_v38 = vld [vmem:[#allocation7] ss:$16 sps:$4 sm:$0xff]   ;;  %v1563_v40 = vld [vmem:[#allocation7 + $0x24] ss:$16 sps:$4 sm:$0xff]  }
  0x6a   : > { %v1566_v41 = vld [vmem:[#allocation7 + $0x2c] ss:$16 sps:$4 sm:$0xff]   ;;  %v1561_v42 = vld [vmem:[#allocation7 + $0x20] ss:$16 sps:$4 sm:$0xff]   ;;  %v1564_v43 = vld [vmem:[#allocation7 + $0x28] ss:$16 sps:$4 sm:$0xff]  }
  0x6b   : > { %v1569_v44 = vld [vmem:[#allocation7 + $0x44] ss:$16 sps:$4 sm:$0xff]   ;;  %v1572_v45 = vld [vmem:[#allocation7 + $0x4c] ss:$16 sps:$4 sm:$0xff]   ;;  %v1567_v46 = vld [vmem:[#allocation7 + $0x40] ss:$16 sps:$4 sm:$0xff]  }
  0x6c   : > { %344 = vmatpush1.bf16.msra.mxu0 %v1529_v16  ;;  %385 = vmatpush1.bf16.msra.mxu1 %v1530_v17  ;;  %v1570_v47 = vld [vmem:[#allocation7 + $0x48] ss:$16 sps:$4 sm:$0xff]   ;;  %v1575_v48 = vld [vmem:[#allocation7 + $0x64] ss:$16 sps:$4 sm:$0xff]   ;;  %v1578_v49 = vld [vmem:[#allocation7 + $0x6c] ss:$16 sps:$4 sm:$0xff]  }
  0x6d   : > { %345 = vmatprep.subr.bf16.mxu0 %v1531_v18  ;;  %386 = vmatprep.subr.bf16.mxu1 %v1533_v19  ;;  %v1573_v50 = vld [vmem:[#allocation7 + $0x60] ss:$16 sps:$4 sm:$0xff]   ;;  %v1576_v51 = vld [vmem:[#allocation7 + $0x68] ss:$16 sps:$4 sm:$0xff]   ;;  %v1581_v52 = vld [vmem:[#allocation7 + $0x84] ss:$16 sps:$4 sm:$0xff]  }
  0x6e   : > { %v1584_v53 = vld [vmem:[#allocation7 + $0x8c] ss:$16 sps:$4 sm:$0xff]   ;;  %v1579_v54 = vld [vmem:[#allocation7 + $0x80] ss:$16 sps:$4 sm:$0xff]   ;;  %v1582_v55 = vld [vmem:[#allocation7 + $0x88] ss:$16 sps:$4 sm:$0xff]  }
  0x6f   : > { %v1587_v56 = vld [vmem:[#allocation7 + $0xa4] ss:$16 sps:$4 sm:$0xff]   ;;  %v1590_v57 = vld [vmem:[#allocation7 + $0xac] ss:$16 sps:$4 sm:$0xff]   ;;  %v1585_v58 = vld [vmem:[#allocation7 + $0xa0] ss:$16 sps:$4 sm:$0xff]  }
  0x70   : > { %346 = vmatpush1.bf16.msra.mxu0 %v1535_v20  ;;  %387 = vmatpush1.bf16.msra.mxu1 %v1536_v21  ;;  %v1588_v59 = vld [vmem:[#allocation7 + $0xa8] ss:$16 sps:$4 sm:$0xff]   ;;  %v1593_v60 = vld [vmem:[#allocation7 + $0xc4] ss:$16 sps:$4 sm:$0xff]   ;;  %v1596_v61 = vld [vmem:[#allocation7 + $0xcc] ss:$16 sps:$4 sm:$0xff]  }
  0x71   : > { %347 = vmatprep.subr.bf16.mxu0 %v1537_v22  ;;  %388 = vmatprep.subr.bf16.mxu1 %v1539_v23  ;;  %v1591_v62 = vld [vmem:[#allocation7 + $0xc0] ss:$16 sps:$4 sm:$0xff]   ;;  %v1594_v63 = vld [vmem:[#allocation7 + $0xc8] ss:$16 sps:$4 sm:$0xff]   ;;  %v1599_v0 = vld [vmem:[#allocation7 + $0xe4] ss:$16 sps:$4 sm:$0xff]  }
  0x72   : > { %v1602_v1 = vld [vmem:[#allocation7 + $0xec] ss:$16 sps:$4 sm:$0xff]   ;;  %v1597_v2 = vld [vmem:[#allocation7 + $0xe0] ss:$16 sps:$4 sm:$0xff]   ;;  %v1600_v4 = vld [vmem:[#allocation7 + $0xe8] ss:$16 sps:$4 sm:$0xff]  }
  0x73   : > { %v108_v5 = vld [vmem:[%s107_s11] sm:$0xf]  ;;  %v1603_v6 = vld [vmem:[#allocation12] ss:$16 sps:$4 sm:$0xff]   ;;  %v1605_v7 = vld [vmem:[#allocation12 + $0x4] ss:$16 sps:$4 sm:$0xff]  }
  0x74   : > { %348 = vmatpush1.bf16.msra.mxu0 %v1541_v24  ;;  %389 = vmatpush1.bf16.msra.mxu1 %v1542_v25  ;;  %v1606_v8 = vld [vmem:[#allocation12 + $0x8] ss:$16 sps:$4 sm:$0xff]   ;;  %v1608_v9 = vld [vmem:[#allocation12 + $0xc] ss:$16 sps:$4 sm:$0xff]   ;;  %v1611_v10 = vld [vmem:[#allocation12 + $0x24] ss:$16 sps:$4 sm:$0xff]  }
  0x75   : > { %349 = vmatprep.subr.bf16.mxu0 %v1543_v26  ;;  %390 = vmatprep.subr.bf16.mxu1 %v1545_v27  ;;  %v1614_v11 = vld [vmem:[#allocation12 + $0x2c] ss:$16 sps:$4 sm:$0xff]   ;;  %v1609_v12 = vld [vmem:[#allocation12 + $0x20] ss:$16 sps:$4 sm:$0xff]   ;;  %v1612_v13 = vld [vmem:[#allocation12 + $0x28] ss:$16 sps:$4 sm:$0xff]  }
  0x76   : > { %v1617_v14 = vld [vmem:[#allocation12 + $0x44] ss:$16 sps:$4 sm:$0xff]   ;;  %v1620_v15 = vld [vmem:[#allocation12 + $0x4c] ss:$16 sps:$4 sm:$0xff]   ;;  %v1615_v16 = vld [vmem:[#allocation12 + $0x40] ss:$16 sps:$4 sm:$0xff]  }
  0x77   : > { %v1618_v17 = vld [vmem:[#allocation12 + $0x48] ss:$16 sps:$4 sm:$0xff]   ;;  %v1623_v18 = vld [vmem:[#allocation12 + $0x64] ss:$16 sps:$4 sm:$0xff]   ;;  %v1626_v19 = vld [vmem:[#allocation12 + $0x6c] ss:$16 sps:$4 sm:$0xff]  }
  0x78   : > { %350 = vmatpush1.bf16.msra.mxu0 %v1547_v28  ;;  %391 = vmatpush1.bf16.msra.mxu1 %v1548_v29  ;;  %v1621_v20 = vld [vmem:[#allocation12 + $0x60] ss:$16 sps:$4 sm:$0xff]   ;;  %v1624_v21 = vld [vmem:[#allocation12 + $0x68] ss:$16 sps:$4 sm:$0xff]   ;;  %v1629_v22 = vld [vmem:[#allocation12 + $0x84] ss:$16 sps:$4 sm:$0xff]  }
  0x79   : > { %351 = vmatprep.subr.bf16.mxu0 %v1549_v30  ;;  %392 = vmatprep.subr.bf16.mxu1 %v1551_v31  ;;  %v1627_v23 = vld [vmem:[#allocation12 + $0x80] ss:$16 sps:$4 sm:$0xff]   ;;  %v1632_v24 = vld [vmem:[#allocation12 + $0x8c] ss:$16 sps:$4 sm:$0xff]   ;;  %v1630_v25 = vld [vmem:[#allocation12 + $0x88] ss:$16 sps:$4 sm:$0xff]  }
  0x7a   : > { %v1635_v26 = vld [vmem:[#allocation12 + $0xa4] ss:$16 sps:$4 sm:$0xff]   ;;  %v1633_v27 = vld [vmem:[#allocation12 + $0xa0] ss:$16 sps:$4 sm:$0xff]   ;;  %v1638_v28 = vld [vmem:[#allocation12 + $0xac] ss:$16 sps:$4 sm:$0xff]  }
  0x7b   : > { %v1636_v29 = vld [vmem:[#allocation12 + $0xa8] ss:$16 sps:$4 sm:$0xff]   ;;  %v1641_v30 = vld [vmem:[#allocation12 + $0xc4] ss:$16 sps:$4 sm:$0xff]   ;;  %v1639_v31 = vld [vmem:[#allocation12 + $0xc0] ss:$16 sps:$4 sm:$0xff]  }
  0x7c   : > { %352 = vmatpush1.bf16.msra.mxu0 %v1553_v32  ;;  %393 = vmatpush1.bf16.msra.mxu1 %v1554_v33  ;;  %v1644_v32 = vld [vmem:[#allocation12 + $0xcc] ss:$16 sps:$4 sm:$0xff]   ;;  %v1642_v33 = vld [vmem:[#allocation12 + $0xc8] ss:$16 sps:$4 sm:$0xff]   ;;  %v1647_v34 = vld [vmem:[#allocation12 + $0xe4] ss:$16 sps:$4 sm:$0xff]  }
  0x7d   : > { %579 = vmatprep.subr.bf16.mxu0 %v1557_v35  ;;  %620 = vmatprep.subr.bf16.mxu1 %v1560_v36  ;;  %v1645_v35 = vld [vmem:[#allocation12 + $0xe0] ss:$16 sps:$4 sm:$0xff]   ;;  %v1650_v36 = vld [vmem:[#allocation12 + $0xec] ss:$16 sps:$4 sm:$0xff]   ;;  %s1484_s22 = sshll.u32 %s1877_s17, 3  ;;  %s105_s17 = sadd.s32 1, %s1877_s17  }
  0x7e   : > { %s1319_s23 = scalar_lea.vmem [#allocation13], %s1484_s22  ;;  %p102_p12 = scmp.ge.s32.totalorder %s105_s17, 9  }
  0x7f   : > { %370 = vmatmul.mubr.bf16.vlgmr.msra.gmra.mrb[0].mxu0 %v176_v37  ;;  %411 = vmatmul.mubr.bf16.vlgmr.msra.gmra.mrb[0].mxu1 %v176_v37  ;;  %v1648_v37 = vld [vmem:[#allocation12 + $0xe8] ss:$16 sps:$4 sm:$0xff]   ;;  %s1890_s24 = smov (%p102_p12), [#allocation13]  }
  0x80   : > { %580 = vmatpush1.bf16.msra.mxu0 %v1555_v38  ;;  %621 = vmatpush1.bf16.msra.mxu1 %v1558_v39  ;;  %v779_v38 = vld [vmem:[#allocation2 + $0x8] sm:$0xff]  ;;  %s1326_s26 = sshll.u32 (%p102_p12), %s1890_s24, 4  ;;  %s1327_s26 = int_to_ptr.vmem [resolvable:$true] %s1326_s26 }
  0x81   : > { %581 = vmatprep.subr.bf16.mxu0 %v1563_v40  ;;  %622 = vmatprep.subr.bf16.mxu1 %v1566_v41  ;;  %v782_v39 = vpack.c.bf16 %v779_v38, %v779_v38  ;;  %v1653_v40 = vld [vmem:[#allocation10 + $0x4] ss:$16 sps:$4 sm:$0xff]   ;;  %v1656_v41 = vld [vmem:[#allocation10 + $0xc] ss:$16 sps:$4 sm:$0xff]   ;;  %s1841_s1 = scalar_lea.vmem (%p102_p12), %s1327_s26, 1152  ;;  %p1846_p0 = scmp.lt.s32.totalorder (%p102_p12), %s1327_s26, %s1327_s26 }
  0x82   : > { %611 = vmatprep.mubr.bf16.mxu0 %v1889_v3  ;;  %652 = vmatprep.mubr.bf16.mxu1 %v1889_v3  ;;  %p1842_p13 = scmp.ne.s32.totalorder (%p102_p12), %s1327_s26, %s1841_s1  ;;  %p1847_p1 = scmp.lt.s32.totalorder (%p102_p12), %s1841_s1, %s1841_s1 }
  0x84   : > { %582 = vmatpush1.bf16.msra.mxu0 %v1561_v42  ;;  %623 = vmatpush1.bf16.msra.mxu1 %v1564_v43  ;;  %v1651_v42 = vld [vmem:[#allocation10] ss:$16 sps:$4 sm:$0xff]   ;;  %v1654_v43 = vld [vmem:[#allocation10 + $0x8] ss:$16 sps:$4 sm:$0xff]   ;;  %p1848_p2 = por (%p102_p12), %p1847_p1, %p1846_p0 }
  0x85   : > { %583 = vmatprep.subr.bf16.mxu0 %v1569_v44  ;;  %624 = vmatprep.subr.bf16.mxu1 %v1572_v45  ;;  %v1659_v44 = vld [vmem:[#allocation10 + $0x24] ss:$16 sps:$4 sm:$0xff]   ;;  %v1662_v45 = vld [vmem:[#allocation10 + $0x2c] ss:$16 sps:$4 sm:$0xff]  }
  0x86   :  { %p1849_p3 = pnand (%p102_p12), %p1848_p2, %p1842_p13 }
  0x88   : > { %584 = vmatpush1.bf16.msra.mxu0 %v1567_v46  ;;  %625 = vmatpush1.bf16.msra.mxu1 %v1570_v47  ;;  %v1657_v46 = vld [vmem:[#allocation10 + $0x20] ss:$16 sps:$4 sm:$0xff]   ;;  %v1660_v47 = vld [vmem:[#allocation10 + $0x28] ss:$16 sps:$4 sm:$0xff]  }
  0x89   : > { %585 = vmatprep.subr.bf16.mxu0 %v1575_v48  ;;  %626 = vmatprep.subr.bf16.mxu1 %v1578_v49  ;;  %v1665_v48 = vld [vmem:[#allocation10 + $0x44] ss:$16 sps:$4 sm:$0xff]   ;;  %v1668_v49 = vld [vmem:[#allocation10 + $0x4c] ss:$16 sps:$4 sm:$0xff]  }
  0x8c   : > { %586 = vmatpush1.bf16.msra.mxu0 %v1573_v50  ;;  %627 = vmatpush1.bf16.msra.mxu1 %v1576_v51  ;;  %v1663_v50 = vld [vmem:[#allocation10 + $0x40] ss:$16 sps:$4 sm:$0xff]   ;;  %v1666_v51 = vld [vmem:[#allocation10 + $0x48] ss:$16 sps:$4 sm:$0xff]  }
  0x8d   : > { %587 = vmatprep.subr.bf16.mxu0 %v1581_v52  ;;  %628 = vmatprep.subr.bf16.mxu1 %v1584_v53  ;;  %v1671_v52 = vld [vmem:[#allocation10 + $0x64] ss:$16 sps:$4 sm:$0xff]   ;;  %v1674_v53 = vld [vmem:[#allocation10 + $0x6c] ss:$16 sps:$4 sm:$0xff]  }
  0x90   : > { %588 = vmatpush1.bf16.msra.mxu0 %v1579_v54  ;;  %629 = vmatpush1.bf16.msra.mxu1 %v1582_v55  ;;  %v1669_v54 = vld [vmem:[#allocation10 + $0x60] ss:$16 sps:$4 sm:$0xff]   ;;  %v1672_v55 = vld [vmem:[#allocation10 + $0x68] ss:$16 sps:$4 sm:$0xff]  }
  0x91   : > { %589 = vmatprep.subr.bf16.mxu0 %v1587_v56  ;;  %630 = vmatprep.subr.bf16.mxu1 %v1590_v57  ;;  %v1680_v56 = vld [vmem:[#allocation10 + $0x8c] ss:$16 sps:$4 sm:$0xff]   ;;  %v1675_v57 = vld [vmem:[#allocation10 + $0x80] ss:$16 sps:$4 sm:$0xff]  }
  0x94   : > { %590 = vmatpush1.bf16.msra.mxu0 %v1585_v58  ;;  %631 = vmatpush1.bf16.msra.mxu1 %v1588_v59  ;;  %v1678_v58 = vld [vmem:[#allocation10 + $0x88] ss:$16 sps:$4 sm:$0xff]   ;;  %v1683_v59 = vld [vmem:[#allocation10 + $0xa4] ss:$16 sps:$4 sm:$0xff]  }
  0x95   : > { %591 = vmatprep.subr.bf16.mxu0 %v1593_v60  ;;  %632 = vmatprep.subr.bf16.mxu1 %v1596_v61  ;;  %v1681_v60 = vld [vmem:[#allocation10 + $0xa0] ss:$16 sps:$4 sm:$0xff]   ;;  %v1686_v61 = vld [vmem:[#allocation10 + $0xac] ss:$16 sps:$4 sm:$0xff]  }
  0x98   : > { %592 = vmatpush1.bf16.msra.mxu0 %v1591_v62  ;;  %633 = vmatpush1.bf16.msra.mxu1 %v1594_v63  ;;  %v1684_v62 = vld [vmem:[#allocation10 + $0xa8] ss:$16 sps:$4 sm:$0xff]   ;;  %v1689_v63 = vld [vmem:[#allocation10 + $0xc4] ss:$16 sps:$4 sm:$0xff]  }
  0x99   : > { %593 = vmatprep.subr.bf16.mxu0 %v1599_v0  ;;  %634 = vmatprep.subr.bf16.mxu1 %v1602_v1  ;;  %v1692_v0 = vld [vmem:[#allocation10 + $0xcc] ss:$16 sps:$4 sm:$0xff]   ;;  %v1687_v1 = vld [vmem:[#allocation10 + $0xc0] ss:$16 sps:$4 sm:$0xff]  }
  0x9c   : > { %594 = vmatpush1.bf16.msra.mxu0 %v1597_v2  ;;  %635 = vmatpush1.bf16.msra.mxu1 %v1600_v4  ;;  %v1690_v2 = vld [vmem:[#allocation10 + $0xc8] ss:$16 sps:$4 sm:$0xff]   ;;  %v1695_v4 = vld [vmem:[#allocation10 + $0xe4] ss:$16 sps:$4 sm:$0xff]  }
  0x9d   : > { %943 = vmatprep.subr.bf16.mxu0 %v1605_v7  ;;  %984 = vmatprep.subr.bf16.mxu1 %v1608_v9  ;;  %v1696_v7 = vld [vmem:[#allocation10 + $0xe8] ss:$16 sps:$4 sm:$0xff]  }
  0x9f   : > { %612 = vmatmul.mubr.bf16.vlgmr.msra.gmra.mrb[4].mxu0 %v108_v5  ;;  %653 = vmatmul.mubr.bf16.vlgmr.msra.gmra.mrb[4].mxu1 %v108_v5  ;;  %v1698_v5 = vld [vmem:[#allocation10 + $0xec] ss:$16 sps:$4 sm:$0xff]  }
  0xa0   : > { %975 = vmatprep.mubr.bf16.mxu0 %v1889_v3  ;;  %1016 = vmatprep.mubr.bf16.mxu1 %v1889_v3 }
  0xa1   : > { %944 = vmatpush1.bf16.msra.mxu0 %v1603_v6  ;;  %985 = vmatpush1.bf16.msra.mxu1 %v1606_v8  ;;  %v1693_v6 = vld [vmem:[#allocation10 + $0xe0] ss:$16 sps:$4 sm:$0xff]  }
  0xa2   : > { %945 = vmatprep.subr.bf16.mxu0 %v1611_v10  ;;  %986 = vmatprep.subr.bf16.mxu1 %v1614_v11 }
  0xa5   : > { %946 = vmatpush1.bf16.msra.mxu0 %v1609_v12  ;;  %987 = vmatpush1.bf16.msra.mxu1 %v1612_v13 }
  0xa6   : > { %947 = vmatprep.subr.bf16.mxu0 %v1617_v14  ;;  %988 = vmatprep.subr.bf16.mxu1 %v1620_v15 }
  0xa9   : > { %948 = vmatpush1.bf16.msra.mxu0 %v1615_v16  ;;  %989 = vmatpush1.bf16.msra.mxu1 %v1618_v17  ;;  %v662_v16 = vlaneseq }
  0xaa   : > { %949 = vmatprep.subr.bf16.mxu0 %v1623_v18  ;;  %990 = vmatprep.subr.bf16.mxu1 %v1626_v19  ;;  %v173_v19 = vld [vmem:[%s2066_s3] sm:$0xf] }
  0xab   : > { %v2019_v17 = vshrl.u32 %v662_v16, 7 }
  0xad   : > { %950 = vmatpush1.bf16.msra.mxu0 %v1621_v20  ;;  %991 = vmatpush1.bf16.msra.mxu1 %v1624_v21  ;;  %v664_v18 = vsub.s32 0, %v2019_v17  ;;  %v668_v20 = vsub.s32 1, %v2019_v17 }
  0xae   : > { %951 = vmatprep.subr.bf16.mxu0 %v1629_v22  ;;  %992 = vmatprep.subr.bf16.mxu1 %v1632_v24 }
  0xaf   : > { %v665_v21 = vrot.slane %v173_v19, %v664_v18  ;;  %v669_v24 = vrot.slane %v173_v19, %v668_v20 }
  0xb1   : > { %952 = vmatpush1.bf16.msra.mxu0 %v1627_v23  ;;  %993 = vmatpush1.bf16.msra.mxu1 %v1630_v25 }
  0xb2   : > { %953 = vmatprep.subr.bf16.mxu0 %v1635_v26  ;;  %994 = vmatprep.subr.bf16.mxu1 %v1638_v28 }
  0xb5   : > { %954 = vmatpush1.bf16.msra.mxu0 %v1633_v27  ;;  %995 = vmatpush1.bf16.msra.mxu1 %v1636_v29 }
  0xb6   : > { %955 = vmatprep.subr.bf16.mxu0 %v1641_v30  ;;  %996 = vmatprep.subr.bf16.mxu1 %v1644_v32 }
  0xb9   : > { %956 = vmatpush1.bf16.msra.mxu0 %v1639_v31  ;;  %997 = vmatpush1.bf16.msra.mxu1 %v1642_v33  ;;  %v676_v31 = vsub.s32 3, %v2019_v17 }
  0xba   : > { %957 = vmatprep.subr.bf16.mxu0 %v1647_v34  ;;  %998 = vmatprep.subr.bf16.mxu1 %v1650_v36 }
  0xbd   : > { %958 = vmatpush1.bf16.msra.mxu0 %v1645_v35  ;;  %999 = vmatpush1.bf16.msra.mxu1 %v1648_v37 }
  0xbe   : > { %1185 = vmatprep.subr.bf16.mxu0 %v1653_v40  ;;  %1226 = vmatprep.subr.bf16.mxu1 %v1656_v41  ;;  %v677_v40 = vrot.slane %v173_v19, %v676_v31  ;;  %v672_v41 = vsub.s32 2, %v2019_v17 }
  0xc0   : > { %976 = vmatmul.mubr.bf16.vlgmr.msra.gmra.mrb[8].mxu0 %v782_v39  ;;  %1017 = vmatmul.mubr.bf16.vlgmr.msra.gmra.mrb[8].mxu1 %v782_v39 }
  0xc1   : > { %1217 = vmatprep.mubr.bf16.mxu0 %v1889_v3  ;;  %1186 = vmatpush1.bf16.msra.mxu0 %v1651_v42 }
  0xc2   : > { %1227 = vmatpush1.bf16.msra.mxu1 %v1654_v43  ;;  %1258 = vmatprep.mubr.bf16.mxu1 %v1889_v3  ;;  %v1677_v3 = vld [vmem:[#allocation10 + $0x84] ss:$16 sps:$4 sm:$0xff]   ;;  %v673_v43 = vrot.slane %v173_v19, %v672_v41 }
  0xc3   : > { %1187 = vmatprep.subr.bf16.mxu0 %v1659_v44  ;;  %1228 = vmatprep.subr.bf16.mxu1 %v1662_v45 }
  0xc5   : > { %1188 = vmatpush1.bf16.msra.mxu0 %v1657_v46 }
  0xc6   : > { %1229 = vmatpush1.bf16.msra.mxu1 %v1660_v47  ;;  %1189 = vmatprep.subr.bf16.mxu0 %v1665_v48 }
  0xc7   : > { %1230 = vmatprep.subr.bf16.mxu1 %v1668_v49 }
  0xc9   : > { %1190 = vmatpush1.bf16.msra.mxu0 %v1663_v50 }
  0xca   : > { %1231 = vmatpush1.bf16.msra.mxu1 %v1666_v51  ;;  %1191 = vmatprep.subr.bf16.mxu0 %v1671_v52  ;;  %v175_v52 = vld [vmem:[#allocation3] sm:$0xff] }
  0xcb   : > { %1232 = vmatprep.subr.bf16.mxu1 %v1674_v53 }
  0xcd   : > { %1192 = vmatpush1.bf16.msra.mxu0 %v1669_v54 }
  0xce   : > { %1233 = vmatpush1.bf16.msra.mxu1 %v1672_v55  ;;  %1193 = vmatprep.subr.bf16.mxu0 %v1677_v3 }
  0xcf   : > { %1234 = vmatprep.subr.bf16.mxu1 %v1680_v56 }
  0xd1   : > { %1194 = vmatpush1.bf16.msra.mxu0 %v1675_v57 }
  0xd2   : > { %1235 = vmatpush1.bf16.msra.mxu1 %v1678_v58  ;;  %1195 = vmatprep.subr.bf16.mxu0 %v1683_v59 }
  0xd3   : > { %1236 = vmatprep.subr.bf16.mxu1 %v1686_v61 }
  0xd5   : > { %1196 = vmatpush1.bf16.msra.mxu0 %v1681_v60 }
  0xd6   : > { %1237 = vmatpush1.bf16.msra.mxu1 %v1684_v62  ;;  %1197 = vmatprep.subr.bf16.mxu0 %v1689_v63 }
  0xd7   : > { %1238 = vmatprep.subr.bf16.mxu1 %v1692_v0 }
  0xd9   : > { %1198 = vmatpush1.bf16.msra.mxu0 %v1687_v1 }
  0xda   : > { %1239 = vmatpush1.bf16.msra.mxu1 %v1690_v2  ;;  %1199 = vmatprep.subr.bf16.mxu0 %v1695_v4 }
  0xdb   : > { %1240 = vmatprep.subr.bf16.mxu1 %v1698_v5 }
  0xdd   : > { %1200 = vmatpush1.bf16.msra.mxu0 %v1693_v6 }
  0xde   : > { %1241 = vmatpush1.bf16.msra.mxu1 %v1696_v7  ;;  %v777_v7 = vld [vmem:[%s2069_s6] sm:$0xf] }
 0x152   : > { %v371_v8 = vpop.f32.mrb[0].mxu0  ;;  %v412_v9 = vpop.f32.mrb[0].mxu1 }
 0x153   : > { %v373_v10 = vpop.f32.mrb[1].mxu0  ;;  %v414_v11 = vpop.f32.mrb[1].mxu1 }
 0x154   : > { %v375_v12 = vpop.f32.mrb[2].mxu0  ;;  %v416_v13 = vpop.f32.mrb[2].mxu1 }
 0x155   : > { %v376_v14 = vpop.f32.mrb[3].mxu0  ;;  %v417_v15 = vpop.f32.mrb[3].mxu1 }
 0x172   : > { %v613_v22 = vpop.f32.mrb[4].mxu0  ;;  %v654_v23 = vpop.f32.mrb[4].mxu1 }
 0x173   : > { %v614_v25 = vadd.f32 %v613_v22, %v371_v8  ;;  %v655_v26 = vadd.f32 %v654_v23, %v412_v9  ;;  %v615_v27 = vpop.f32.mrb[5].mxu0  ;;  %v656_v28 = vpop.f32.mrb[5].mxu1  ;;  %v1271_v8 = vrot.slane %v777_v7, %v664_v18  ;;  %v1283_v18 = vrot.slane %v777_v7, %v676_v31  ;;  %v781_v31 = vld [vmem:[#allocation3 + $0x8] sm:$0xff] }
 0x174   : > { %v616_v29 = vadd.f32 %v615_v27, %v373_v10  ;;  %v657_v30 = vadd.f32 %v656_v28, %v414_v11  ;;  %v617_v32 = vpop.f32.mrb[6].mxu0  ;;  %v658_v33 = vpop.f32.mrb[6].mxu1  ;;  %v1275_v11 = vrot.slane %v777_v7, %v668_v20 }
 0x175   : > { %v682_v34 = vadd.f32 %v665_v21, %v614_v25  ;;  %v618_v35 = vpop.f32.mrb[7].mxu0  ;;  %v659_v36 = vpop.f32.mrb[7].mxu1  ;;  %v684_v45 = vadd.f32 %v673_v43, %v655_v26 }
 0x176   : > { %v683_v37 = vadd.f32 %v669_v24, %v616_v29  ;;  %v685_v42 = vadd.f32 %v677_v40, %v657_v30  ;;  %v1279_v29 = vrot.slane %v777_v7, %v672_v41 }
 0x177   : > { %v1414_v38 = vmul.f32 -1.442695, %v682_v34 }
 0x178   : > { %v1415_v39 = vmul.f32 -1.442695, %v683_v37  ;;  %v1416_v44 = vmul.f32 -1.442695, %v685_v42 }
 0x179   : > { %1699 = vpow2.f32 %v1414_v38 }
 0x17a   : > { %1701 = vpow2.f32 %v1415_v39 }
 0x17b   : > { %1703 = vpow2.f32 %v1416_v44 }
 0x17c   : > { %1705 = vtanh.f32 %v684_v45 }
 0x183   : > { %v1700_v46 = vpop.eup %1699 }
 0x184   : > { %v1702_v47 = vpop.eup %1701  ;;  %v689_v48 = vadd.f32 1.0, %v1700_v46 }
 0x185   : > { %v695_v49 = vadd.f32 1.0, %v1702_v47  ;;  %v1704_v50 = vpop.eup %1703 }
 0x186   : > { %1707 = vrcp.f32 %v689_v48  ;;  %v1706_v51 = vpop.eup %1705  ;;  %v702_v3 = vadd.f32 1.0, %v1704_v50 }
 0x187   : > { %1709 = vrcp.f32 %v695_v49 }
 0x188   : > { %1711 = vrcp.f32 %v702_v3 }
 0x190   : > { %v1708_v53 = vpop.eup %1707 }
 0x191   : > { %v1710_v54 = vpop.eup %1709  ;;  %v706_v55 = vmul.f32 %v1708_v53, %v1706_v51 }
 0x192   : > { %v705_v56 = vmul.f32 %v1710_v54, %v175_v52  ;;  %v1712_v58 = vpop.eup %1711 }
 0x193   : > { %v977_v62 = vpop.f32.mrb[8].mxu0  ;;  %v1018_v2 = vpop.f32.mrb[8].mxu1 }
 0x194   : > { %v707_v57 = vadd.f32 %v706_v55, %v705_v56  ;;  %v979_v63 = vpop.f32.mrb[9].mxu0  ;;  %v1020_v4 = vpop.f32.mrb[9].mxu1 }
 0x195   : > { %v981_v0 = vpop.f32.mrb[10].mxu0  ;;  %v1022_v5 = vpop.f32.mrb[10].mxu1 }
 0x196   : > { %711 = vst [vmem:[#allocation3] sm:$0xff] %v707_v57  ;;  %1713 = vtanh.f32 %v707_v57  ;;  %v982_v1 = vpop.f32.mrb[11].mxu0  ;;  %v1023_v6 = vpop.f32.mrb[11].mxu1 }
 0x1a0   : > { %v1714_v59 = vpop.eup %1713 }
 0x1a1   : > { %v709_v60 = vmul.f32 %v1714_v59, %v1712_v58 }
 0x1a3   : > { %710 = vst [vmem:[#allocation2] sm:$0xff] %v709_v60  ;;  %v712_v61 = vpack.c.bf16 %v709_v60, %v709_v60 }
 0x1a5   : > { %1218 = vmatmul.mubr.bf16.vlgmr.msra.gmra.mrb[12].mxu0 %v712_v61  ;;  %1259 = vmatmul.mubr.bf16.vlgmr.msra.gmra.mrb[12].mxu1 %v712_v61 }
 0x278   : > { %v1219_v9 = vpop.f32.mrb[12].mxu0  ;;  %v1260_v10 = vpop.f32.mrb[12].mxu1 }
 0x279   : > { %v1220_v12 = vadd.f32 %v1219_v9, %v977_v62  ;;  %v1261_v13 = vadd.f32 %v1260_v10, %v1018_v2  ;;  %v1221_v14 = vpop.f32.mrb[13].mxu0  ;;  %v1262_v15 = vpop.f32.mrb[13].mxu1 }
 0x27a   : > { %v1222_v16 = vadd.f32 %v1221_v14, %v979_v63  ;;  %v1263_v19 = vadd.f32 %v1262_v15, %v1020_v4  ;;  %v1223_v21 = vpop.f32.mrb[14].mxu0  ;;  %v1264_v22 = vpop.f32.mrb[14].mxu1 }
 0x27b   : > { %v1288_v23 = vadd.f32 %v1271_v8, %v1220_v12  ;;  %v1224_v24 = vpop.f32.mrb[15].mxu0  ;;  %v1265_v25 = vpop.f32.mrb[15].mxu1  ;;  %v1290_v32 = vadd.f32 %v1279_v29, %v1261_v13 }
 0x27c   : > { %v1289_v26 = vadd.f32 %v1275_v11, %v1222_v16  ;;  %v1291_v20 = vadd.f32 %v1283_v18, %v1263_v19 }
 0x27d   : > { %v1481_v27 = vmul.f32 -1.442695, %v1288_v23 }
 0x27e   : > { %v1482_v28 = vmul.f32 -1.442695, %v1289_v26  ;;  %v1483_v30 = vmul.f32 -1.442695, %v1291_v20 }
 0x27f   : > { %1715 = vpow2.f32 %v1481_v27 }
 0x280   : > { %1717 = vpow2.f32 %v1482_v28 }
 0x281   : > { %1719 = vpow2.f32 %v1483_v30 }
 0x282   : > { %1721 = vtanh.f32 %v1290_v32 }
 0x289   : > { %v1716_v33 = vpop.eup %1715 }
 0x28a   : > { %v1718_v34 = vpop.eup %1717  ;;  %v1295_v35 = vadd.f32 1.0, %v1716_v33 }
 0x28b   : > { %v1301_v36 = vadd.f32 1.0, %v1718_v34  ;;  %v1720_v37 = vpop.eup %1719 }
 0x28c   : > { %1723 = vrcp.f32 %v1295_v35  ;;  %v1722_v38 = vpop.eup %1721  ;;  %v1308_v43 = vadd.f32 1.0, %v1720_v37 }
 0x28d   : > { %1725 = vrcp.f32 %v1301_v36 }
 0x28e   : > { %1727 = vrcp.f32 %v1308_v43 }
 0x296   : > { %v1724_v39 = vpop.eup %1723 }
 0x297   : > { %v1726_v40 = vpop.eup %1725  ;;  %v1312_v42 = vmul.f32 %v1724_v39, %v1722_v38 }
 0x298   : > { %v1311_v17 = vmul.f32 %v1726_v40, %v781_v31  ;;  %v1728_v44 = vpop.eup %1727 }
 0x29a   : > { %v1313_v41 = vadd.f32 %v1312_v42, %v1311_v17 }
 0x29c   : > { %1729 = vtanh.f32 %v1313_v41  ;;  %1317 = vst [vmem:[#allocation3 + $0x8] sm:$0xff] %v1313_v41 }
 0x2a3   :  { %104 = sbr.rel (!%p102_p12) target bundleno = 93 (0x5d), region = 79 }
 0x2a6   : > { %v1730_v45 = vpop.eup %1729 }
 0x2a7   : > { %v1315_v46 = vmul.f32 %v1730_v45, %v1728_v44 }
 0x2a9   : > { %1316 = vst [vmem:[#allocation2 + $0x8] sm:$0xff] %v1315_v46  ;;  %1320 = vst [vmem:[%s1319_s23] sm:$0xff] %v1315_v46 }
 0x2aa   :  { %1852 = shalt.err (!%p1849_p3)
}
 0x2ab   :  { %s1853_s28 = scalar_lea.hbm %s2070_s7, 1152 }
 0x2ac   :  { %p1854_p4 = scmp.ne.s32.totalorder %s2070_s7, %s1853_s28  ;;  %p1857_p5 = scmp.lt.u32.totalorder %s1853_s28, %s2070_s7 }
 0x2ae   :  { %p1859_p6 = pnand %p1857_p5, %p1854_p4 }
 0x2b0   :  { %1862 = shalt.err (!%p1859_p6)
}
 0x2b1   :  { %s1891_s3 = smov 128   ;;  %s1892_s6 = smov 8  }
 0x2b2   :  { %1332 = dma.vmem_to_hbm [thread:$0]  %s1327_s26, 1152, %s2070_s7, [#allocation6], %s1891_s3, %s1891_s3, %s1892_s6  }
 0x2b3   :  { %1873 = dma.done.wait [#allocation6], 1152  }
 0x2b4   :  { %1874 = vsyncadd [#allocation6], 4294966144 }
 0x2b5   :  { %1336 = vsyncpa [#allocation5], 1 }
 0x2b6   :  { %1337 = vsyncpa [#allocation8], 1 }
 0x2b7   :  { %1338 = vsyncpa [#allocation11], 1 }
 0x2b8   :  { %1339 = vsyncpa [#allocation6], 1 }

</bundles_post_ra>
